<compile_context>
chip_gen: v5e
topology: v5e:2x2
jax: 0.10.0
libtpu: 0.0.40
codegen_flags: <defaults>
</compile_context>

<pallas_src>
import numpy as np
import jax
import jax.numpy as jnp
from jax.experimental import pallas as pl
from jax.experimental.pallas import tpu as pltpu


# ---------------------------------------------------------------------------
# Graph preprocessing (plain numpy, matches the PyTorch helpers used in
# __init__: scaled_Laplacian + cheb_polynomial).  Init-time work, not kernel.
# ---------------------------------------------------------------------------
def scaled_laplacian(adj: np.ndarray) -> np.ndarray:
    d = np.diag(adj.sum(axis=1))
    lap = d - adj
    lambda_max = float(np.max(np.linalg.eigvalsh(lap)))
    return (2.0 * lap) / lambda_max - np.identity(adj.shape[0])


def cheb_polynomial(l_tilde: np.ndarray, k: int) -> np.ndarray:
    n = l_tilde.shape[0]
    polys = [np.identity(n), l_tilde.copy()]
    for _ in range(2, k):
        polys.append(2.0 * l_tilde @ polys[-1] - polys[-2])
    return np.stack(polys[:k], axis=0).astype(np.float32)  # (K, N, N)


# ---------------------------------------------------------------------------
# One-time (init) parameter prep:
#   tt_cat     (N, K*N)       : [T_0^T | T_1^T | ... | T_{K-1}^T]   (static)
#   theta_wide (C_in, K*Cp)   : Theta_k zero-padded to Cp=128n lanes, stacked.
# ---------------------------------------------------------------------------
def prepare_cheb_conv(cheb_polys, theta, lane=128):
    k, n, _ = cheb_polys.shape
    c_in, c_out = theta.shape[1], theta.shape[2]
    c_out_pad = ((c_out + lane - 1) // lane) * lane

    # Pre-transpose + concatenate once at init -> no in-kernel transposes and
    # a single K*N-deep contraction in the kernel.
    tt_cat = jnp.concatenate([cheb_polys[i].T for i in range(k)], axis=1)  # (N, K*N)

    theta_pad = jnp.zeros((k, c_in, c_out_pad), theta.dtype).at[:, :, :c_out].set(theta)
    theta_wide = jnp.transpose(theta_pad, (1, 0, 2)).reshape(c_in, k * c_out_pad)
    return tt_cat, theta_wide


# ---------------------------------------------------------------------------
# Pallas kernel:  relu( sum_k T_k^T @ (x_b @ Theta_k) )  for BB batch elements
# per grid step, expressed as ONE (N, K*N) x (K*N, BB*Cp) matmul.
# (associativity: identical math to (T_k^T @ x) @ Theta_k, fp rounding aside)
# ---------------------------------------------------------------------------
def _cheb_conv_kernel(x_ref, ttc_ref, thw_ref, o_ref, p_ref):
    # x_ref:   (BB, N, C_in)          BB batch elements
    # ttc_ref: (N, K*N)               [T_0^T | ... | T_{K-1}^T]
    # thw_ref: (C_in, K*Cp)           stacked, lane-padded Theta
    # o_ref:   (BB, N, Cp)            lane-dense output block
    # p_ref:   (K*N, BB*Cp)           VMEM scratch: stacked x@Theta products
    bb, n, _ = x_ref.shape
    cp = o_ref.shape[-1]
    k_total = thw_ref.shape[1] // cp

    # 1) Channel-mix: one folded matmul per batch element against all K Thetas
    #    (contraction dim = C_in).  Cast once (hoisted out of the k loop);
    #    it's a no-op in f32 mode.  Results land in the (K*N, BB*Cp) scratch,
    #    row block k, lane block b -- all slices are 8/128-aligned views.
    for b in range(bb):
        p_b = jnp.dot(x_ref[b], thw_ref[...], preferred_element_type=jnp.float32)
        p_b = p_b.astype(p_ref.dtype)
        for k in range(k_total):
            p_ref[k * n:(k + 1) * n, b * cp:(b + 1) * cp] = \
                p_b[:, k * cp:(k + 1) * cp]

    # 2) Single deep matmul: contraction depth K*N, lane width BB*Cp (256 for
    #    BB=2 -> fills the 256-wide MXU on v6e/v7x).  The sum over k happens
    #    inside the contraction, so no accumulator adds / zeros-init needed.
    out_wide = jnp.dot(ttc_ref[...], p_ref[...], preferred_element_type=jnp.float32)
    out_wide = jnp.maximum(out_wide, 0.0)

    # 3) Lane-aligned per-batch stores.  Padded lanes are exactly zero
    #    (zero Theta padding, relu(0)=0); any future bias must only touch the
    #    first C_out lanes.
    for b in range(bb):
        o_ref[b, :, :] = out_wide[:, b * cp:(b + 1) * cp].astype(o_ref.dtype)


def cheb_conv_forward(x, tt_cat, theta_wide, c_out, *,
                      compute_dtype=None, batch_block=2):
    """x: (B, N, C_in); tt_cat/theta_wide from prepare_cheb_conv.

    Returns (B, N, C_out) float32.
    compute_dtype=jnp.bfloat16 runs bf16 operands / f32 accumulation (faster on
    v5e/v6e/v7x MXUs, halves the weight footprint) -- loosen comparison
    tolerances vs an f32 reference in that mode.
    """
    b, n, c_in = x.shape
    kn = tt_cat.shape[1]
    k = kn // n
    c_out_pad = theta_wide.shape[1] // k

    # Pack batch elements per grid step (widens the heavy-matmul RHS; collapses
    # the tiny demo to a single grid step).  Fall back to 1 if B isn't divisible.
    bb = batch_block if (batch_block and batch_block > 0 and b % batch_block == 0) else 1

    if compute_dtype is not None:
        x = x.astype(compute_dtype)
        tt_cat = tt_cat.astype(compute_dtype)
        theta_wide = theta_wide.astype(compute_dtype)

    op_dtype = x.dtype
    isz = jnp.dtype(op_dtype).itemsize

    # Resident VMEM: 2 pipeline buffers for the per-step x/out blocks, the
    # (grid-invariant, but still double-buffered by default) weight blocks, and
    # the single stacked-product scratch.  Cap by the device's real capacity.
    resident = (2 * bb * n * c_in * isz              # x block
                + 2 * bb * n * c_out_pad * 4         # out block (f32)
                + 2 * n * kn * isz                   # tt_cat
                + 2 * c_in * k * c_out_pad * isz     # theta_wide
                + kn * bb * c_out_pad * isz)         # p scratch
    try:
        cap = int(getattr(pltpu.get_tpu_info(), "vmem_capacity_bytes", 64 << 20))
    except Exception:  # pragma: no cover - defensive (interpret mode etc.)
        cap = 64 << 20
    cap -= 8 << 20  # headroom for compiler-internal scratch
    vmem_limit = int(min(max(resident + (4 << 20), 16 << 20), cap))

    out_padded = pl.pallas_call(
        _cheb_conv_kernel,
        out_shape=jax.ShapeDtypeStruct((b, n, c_out_pad), jnp.float32),
        grid_spec=pltpu.PrefetchScalarGridSpec(
            num_scalar_prefetch=0,
            grid=(b // bb,),
            in_specs=[
                # BB batch elements per grid step
                pl.BlockSpec((bb, n, c_in), lambda i: (i, 0, 0)),
                # grid-invariant concatenated pre-transposed Chebyshev stack
                pl.BlockSpec((n, kn), lambda i: (0, 0)),
                # grid-invariant stacked / lane-padded Theta
                pl.BlockSpec((c_in, k * c_out_pad), lambda i: (0, 0)),
            ],
            out_specs=pl.BlockSpec((bb, n, c_out_pad), lambda i: (i, 0, 0)),
            scratch_shapes=[pltpu.VMEM((kn, bb * c_out_pad), op_dtype)],
        ),
        compiler_params=pltpu.CompilerParams(
            dimension_semantics=("parallel",),   # batch blocks shard across TCs
            vmem_limit_bytes=vmem_limit,
        ),
    )(x, tt_cat, theta_wide)

    # Drop the lane padding (padded columns are exactly zero).
    # TODO(synk): downstream layers could consume the padded layout directly to
    # avoid this extra HBM round trip on bandwidth-limited v5e.
    return out_padded[:, :, :c_out]


# ---------------------------------------------------------------------------
# Pure-JAX reference (faithful to the PyTorch operation order).
# ---------------------------------------------------------------------------
def cheb_conv_ref(x, cheb_polys, theta):
    hi = jax.lax.Precision.HIGHEST
    out = jnp.zeros((x.shape[0], x.shape[1], theta.shape[-1]), jnp.float32)
    for k in range(cheb_polys.shape[0]):
        rhs = jnp.einsum("mn,bmc->bnc", cheb_polys[k], x, precision=hi)
        out = out + jnp.einsum("bnc,co->bno", rhs, theta[k], precision=hi)
    return jax.nn.relu(out)


if __name__ == "__main__":
    # Small shapes consistent with the module: B=2 batch, N=16 vertices,
    # C_in=4 input features, C_out=8 output features, K=3 Chebyshev order.
    B, N, C_IN, C_OUT, K = 2, 16, 4, 8, 3

    key = jax.random.PRNGKey(0)
    k_adj, k_x, k_theta = jax.random.split(key, 3)

    # Deterministic symmetric adjacency with zero diagonal.
    a = jax.random.uniform(k_adj, (N, N), dtype=jnp.float32)
    adj = np.array((a + a.T) * 0.5)
    np.fill_diagonal(adj, 0.0)

    # Init-time graph preprocessing (matches the PyTorch __init__).
    l_tilde = scaled_laplacian(adj.astype(np.float64))
    cheb_polys = jnp.asarray(cheb_polynomial(l_tilde, K))          # (K, N, N)

    # Theta parameters ~ torch.randn(in_channels, out_channels) per k.
    theta = jax.random.normal(k_theta, (K, C_IN, C_OUT), dtype=jnp.float32)

    # Input signal x: (B, N, C_in).
    x = jax.random.normal(k_x, (B, N, C_IN), dtype=jnp.float32)

    # One-time parameter prep (concat-transposed T, lane-pad + stack Theta).
    tt_cat, theta_wide = prepare_cheb_conv(cheb_polys, theta)

    out = cheb_conv_forward(x, tt_cat, theta_wide, C_OUT)
    out = jax.block_until_ready(out)

    ref = cheb_conv_ref(x, cheb_polys, theta)
    # Math is identical; tolerance covers f32 rounding from the re-associated
    # / folded matmul order inside the kernel (use ~2e-2 with bf16 operands).
    np.testing.assert_allclose(np.array(out), np.array(ref), rtol=2e-4, atol=2e-4)

    print("KERNEL_OK")
</pallas_src>

<mosaic_0001>
module attributes {stable_mosaic.version = 11 : i64} {
  func.func @_cheb_conv_kernel(%arg0: i32, %arg1: memref<2x16x4xf32, #tpu.memory_space<vmem>>, %arg2: memref<16x48xf32, #tpu.memory_space<vmem>>, %arg3: memref<4x384xf32, #tpu.memory_space<vmem>>, %arg4: memref<2x16x128xf32, #tpu.memory_space<vmem>>, %arg5: memref<48x256xf32, #tpu.memory_space<vmem>>) attributes {dimension_semantics = [#tpu.dimension_semantics<parallel>], iteration_bounds = array<i64: 1>, scalar_prefetch = 0 : i64, scratch_operands = 1 : i64, tpu.core_type = #tpu.core_type<tc>, window_params = [{transform_indices = @transform_0, window_bounds = array<i64: 2, 16, 4>}, {pipeline_mode = #tpu.pipeline_mode<synchronous>, transform_indices = @transform_1, window_bounds = array<i64: 16, 48>}, {pipeline_mode = #tpu.pipeline_mode<synchronous>, transform_indices = @transform_2, window_bounds = array<i64: 4, 384>}, {transform_indices = @transform_3, window_bounds = array<i64: 2, 16, 128>}]} {
    %c0 = arith.constant 0 : index
    %c0_0 = arith.constant 0 : index
    %c0_1 = arith.constant 0 : index
    %0 = vector.load %arg1[%c0, %c0_0, %c0_1] : memref<2x16x4xf32, #tpu.memory_space<vmem>>, vector<1x16x4xf32>
    %1 = vector.shape_cast %0 : vector<1x16x4xf32> to vector<16x4xf32>
    %c0_2 = arith.constant 0 : index
    %c0_3 = arith.constant 0 : index
    %2 = vector.load %arg3[%c0_2, %c0_3] : memref<4x384xf32, #tpu.memory_space<vmem>>, vector<4x384xf32>
    %cst = arith.constant dense<0.000000e+00> : vector<16x384xf32>
    %3 = tpu.matmul %1, %2, %cst {dimension_numbers = #tpu.dot_dimension_numbers<[1], [0], [0], [1], [0, 0, 1, 1], [], []>} : vector<16x4xf32>, vector<4x384xf32>, vector<16x384xf32> -> vector<16x384xf32>
    %4 = vector.extract_strided_slice %3 {offsets = [0, 0], sizes = [16, 128], strides = [1, 1]} : vector<16x384xf32> to vector<16x128xf32>
    %c0_4 = arith.constant 0 : index
    %c0_5 = arith.constant 0 : index
    %5 = vector.load %arg5[%c0_4, %c0_5] : memref<48x256xf32, #tpu.memory_space<vmem>>, vector<16x128xf32>
    tpu.vector_store %arg5[%c0_4, %c0_5], %4 {strides = array<i32>} : memref<48x256xf32, #tpu.memory_space<vmem>>, vector<16x128xf32>,
    %6 = vector.extract_strided_slice %3 {offsets = [0, 128], sizes = [16, 128], strides = [1, 1]} : vector<16x384xf32> to vector<16x128xf32>
    %c16 = arith.constant 16 : index
    %c0_6 = arith.constant 0 : index
    %7 = vector.load %arg5[%c16, %c0_6] : memref<48x256xf32, #tpu.memory_space<vmem>>, vector<16x128xf32>
    tpu.vector_store %arg5[%c16, %c0_6], %6 {strides = array<i32>} : memref<48x256xf32, #tpu.memory_space<vmem>>, vector<16x128xf32>,
    %8 = vector.extract_strided_slice %3 {offsets = [0, 256], sizes = [16, 128], strides = [1, 1]} : vector<16x384xf32> to vector<16x128xf32>
    %c32 = arith.constant 32 : index
    %c0_7 = arith.constant 0 : index
    %9 = vector.load %arg5[%c32, %c0_7] : memref<48x256xf32, #tpu.memory_space<vmem>>, vector<16x128xf32>
    tpu.vector_store %arg5[%c32, %c0_7], %8 {strides = array<i32>} : memref<48x256xf32, #tpu.memory_space<vmem>>, vector<16x128xf32>,
    %c1 = arith.constant 1 : index
    %c0_8 = arith.constant 0 : index
    %c0_9 = arith.constant 0 : index
    %10 = vector.load %arg1[%c1, %c0_8, %c0_9] : memref<2x16x4xf32, #tpu.memory_space<vmem>>, vector<1x16x4xf32>
    %11 = vector.shape_cast %10 : vector<1x16x4xf32> to vector<16x4xf32>
    %c0_10 = arith.constant 0 : index
    %c0_11 = arith.constant 0 : index
    %12 = vector.load %arg3[%c0_10, %c0_11] : memref<4x384xf32, #tpu.memory_space<vmem>>, vector<4x384xf32>
    %cst_12 = arith.constant dense<0.000000e+00> : vector<16x384xf32>
    %13 = tpu.matmul %11, %12, %cst_12 {dimension_numbers = #tpu.dot_dimension_numbers<[1], [0], [0], [1], [0, 0, 1, 1], [], []>} : vector<16x4xf32>, vector<4x384xf32>, vector<16x384xf32> -> vector<16x384xf32>
    %14 = vector.extract_strided_slice %13 {offsets = [0, 0], sizes = [16, 128], strides = [1, 1]} : vector<16x384xf32> to vector<16x128xf32>
    %c0_13 = arith.constant 0 : index
    %c128 = arith.constant 128 : index
    %15 = vector.load %arg5[%c0_13, %c128] : memref<48x256xf32, #tpu.memory_space<vmem>>, vector<16x128xf32>
    tpu.vector_store %arg5[%c0_13, %c128], %14 {strides = array<i32>} : memref<48x256xf32, #tpu.memory_space<vmem>>, vector<16x128xf32>,
    %16 = vector.extract_strided_slice %13 {offsets = [0, 128], sizes = [16, 128], strides = [1, 1]} : vector<16x384xf32> to vector<16x128xf32>
    %c16_14 = arith.constant 16 : index
    %c128_15 = arith.constant 128 : index
    %17 = vector.load %arg5[%c16_14, %c128_15] : memref<48x256xf32, #tpu.memory_space<vmem>>, vector<16x128xf32>
    tpu.vector_store %arg5[%c16_14, %c128_15], %16 {strides = array<i32>} : memref<48x256xf32, #tpu.memory_space<vmem>>, vector<16x128xf32>,
    %18 = vector.extract_strided_slice %13 {offsets = [0, 256], sizes = [16, 128], strides = [1, 1]} : vector<16x384xf32> to vector<16x128xf32>
    %c32_16 = arith.constant 32 : index
    %c128_17 = arith.constant 128 : index
    %19 = vector.load %arg5[%c32_16, %c128_17] : memref<48x256xf32, #tpu.memory_space<vmem>>, vector<16x128xf32>
    tpu.vector_store %arg5[%c32_16, %c128_17], %18 {strides = array<i32>} : memref<48x256xf32, #tpu.memory_space<vmem>>, vector<16x128xf32>,
    %c0_18 = arith.constant 0 : index
    %c0_19 = arith.constant 0 : index
    %20 = vector.load %arg2[%c0_18, %c0_19] : memref<16x48xf32, #tpu.memory_space<vmem>>, vector<16x48xf32>
    %c0_20 = arith.constant 0 : index
    %c0_21 = arith.constant 0 : index
    %21 = vector.load %arg5[%c0_20, %c0_21] : memref<48x256xf32, #tpu.memory_space<vmem>>, vector<48x256xf32>
    %cst_22 = arith.constant dense<0.000000e+00> : vector<16x256xf32>
    %22 = tpu.matmul %20, %21, %cst_22 {dimension_numbers = #tpu.dot_dimension_numbers<[1], [0], [0], [1], [0, 0, 1, 1], [], []>} : vector<16x48xf32>, vector<48x256xf32>, vector<16x256xf32> -> vector<16x256xf32>
    %cst_23 = arith.constant 0.000000e+00 : f32
    %23 = vector.broadcast %cst_23 : f32 to vector<16x256xf32>
    %24 = arith.maximumf %22, %23 : vector<16x256xf32>
    %25 = vector.extract_strided_slice %24 {offsets = [0, 0], sizes = [16, 128], strides = [1, 1]} : vector<16x256xf32> to vector<16x128xf32>
    %c0_24 = arith.constant 0 : index
    %c0_25 = arith.constant 0 : index
    %c0_26 = arith.constant 0 : index
    %26 = vector.load %arg4[%c0_24, %c0_25, %c0_26] : memref<2x16x128xf32, #tpu.memory_space<vmem>>, vector<1x16x128xf32>
    %27 = vector.shape_cast %26 : vector<1x16x128xf32> to vector<16x128xf32>
    %28 = vector.shape_cast %25 : vector<16x128xf32> to vector<1x16x128xf32>
    tpu.vector_store %arg4[%c0_24, %c0_25, %c0_26], %28 {strides = array<i32>} : memref<2x16x128xf32, #tpu.memory_space<vmem>>, vector<1x16x128xf32>,
    %29 = vector.extract_strided_slice %24 {offsets = [0, 128], sizes = [16, 128], strides = [1, 1]} : vector<16x256xf32> to vector<16x128xf32>
    %c1_27 = arith.constant 1 : index
    %c0_28 = arith.constant 0 : index
    %c0_29 = arith.constant 0 : index
    %30 = vector.load %arg4[%c1_27, %c0_28, %c0_29] : memref<2x16x128xf32, #tpu.memory_space<vmem>>, vector<1x16x128xf32>
    %31 = vector.shape_cast %30 : vector<1x16x128xf32> to vector<16x128xf32>
    %32 = vector.shape_cast %29 : vector<16x128xf32> to vector<1x16x128xf32>
    tpu.vector_store %arg4[%c1_27, %c0_28, %c0_29], %32 {strides = array<i32>} : memref<2x16x128xf32, #tpu.memory_space<vmem>>, vector<1x16x128xf32>,
    return
  }
  func.func @transform_0(%arg0: i32) -> (i32, i32, i32) {
    %c0_i32 = arith.constant 0 : i32
    %c0_i32_0 = arith.constant 0 : i32
    %c0_i32_1 = arith.constant 0 : i32
    return %arg0, %c0_i32, %c0_i32_0 : i32, i32, i32
  }
  func.func @transform_1(%arg0: i32) -> (i32, i32) {
    %c0_i32 = arith.constant 0 : i32
    %c0_i32_0 = arith.constant 0 : i32
    %c0_i32_1 = arith.constant 0 : i32
    return %c0_i32, %c0_i32_0 : i32, i32
  }
  func.func @transform_2(%arg0: i32) -> (i32, i32) {
    %c0_i32 = arith.constant 0 : i32
    %c0_i32_0 = arith.constant 0 : i32
    %c0_i32_1 = arith.constant 0 : i32
    return %c0_i32, %c0_i32_0 : i32, i32
  }
  func.func @transform_3(%arg0: i32) -> (i32, i32, i32) {
    %c0_i32 = arith.constant 0 : i32
    %c0_i32_0 = arith.constant 0 : i32
    %c0_i32_1 = arith.constant 0 : i32
    return %arg0, %c0_i32, %c0_i32_0 : i32, i32, i32
  }
}

</mosaic_0001>

<bundles_post_ra>
// kernel: tpu_custom_call.1
= control target key start
LH: loop header
LB: loop body
LE: loop exit
PB: predicated region body
PF: predicated region fallthrough
CT: control target
= control target key end

     0   :  { %s434_s0 = inlined_call_operand.vmem [shape: f32[2,16,4], index: 0, kind: input, shape index: {}]   ;;  %s435_s1 = inlined_call_operand.vmem [shape: f32[16,48], index: 1, kind: input, shape index: {}]   ;;  %s436_s2 = inlined_call_operand.vmem [shape: f32[4,384], index: 2, kind: input, shape index: {}]   ;;  %s437_s3 = inlined_call_operand.hbm [shape: f32[2,16,128], index: 3, kind: output, shape index: {}]  }
   0x1   :  { %v17_v0 = vld [vmem:[%s436_s2] sm:$0xff]  ;;  %v18_v1 = vld [vmem:[%s436_s2 + $0x8] sm:$0xf] }
   0x2   :  { %21 = vst [vmem:[#allocation1] ss:$2 sm:$0xff] %v17_v0 }
   0x3   :  { %23 = vst [vmem:[#allocation1 + $0x10] ss:$2 sm:$0xff] %v18_v1 }
   0x4   :  { %8 = vsyncpa [#allocation4], 0  ;;  %vm34_vm0 = vcmask 1043456   ;;  %v120_v2 = vld [vmem:[%s436_s2 + $0x8] sm:$0xf]  ;;  %v15_v3 = vld [vmem:[%s434_s0] sm:$0xff] }
   0x5   :  { %vm27_vm1 = vcmask 31744   ;;  %v16_v7 = vld [vmem:[%s434_s0 + $0x8] sm:$0xff]  ;;  %v319_v11 = vld [vmem:[%s434_s0 + $0x10] sm:$0xff]  ;;  %v320_v12 = vld [vmem:[%s434_s0 + $0x18] sm:$0xff]  ;;  %vm230_vm2 = vcmask 392192   ;;  %s363_s28 = smov [#allocation3]  }
   0x6   :  { %v216_v22 = vld [vmem:[%s435_s1] sm:$0xff]  ;;  %v217_v26 = vld [vmem:[%s435_s1 + $0x8] sm:$0xff]  ;;  %s296_s29 = sshll.u32 %s363_s28, 4  ;;  %s298_s1 = sshll.u32 %s437_s3, 4  ;;  %s297_s29 = int_to_ptr.vmem [resolvable:$true] %s296_s29  ;;  %s299_s1 = int_to_ptr.hbm [resolvable:$true] %s298_s1 }
   0x7   :  { %s364_s5 = smov 128   ;;  %s365_s6 = smov 8  }
   0x9   :  { %v25_v4 = vld.sshfl [vmem:[#allocation1 + $0x8] sm:$0xff pattern:$0x75316420]  ;;  %v24_v5 = vld.sshfl [vmem:[#allocation1] sm:$0xff pattern:$0x75316420] }
   0xa   :  { %313 = vmatpush.msk.msra.mxu1 %vm34_vm0, %v25_v4  ;;  %v26_v6 = vld.sshfl [vmem:[#allocation1 + $0x10] sm:$0xff pattern:$0x75316420]  ;;  %310 = vmatpush.msk.msra.mxu0 %vm34_vm0, %v24_v5  ;;  %123 = vst [vmem:[#allocation1] ss:$2 sm:$0xff] %v17_v0 }
   0xb   :  { %316 = vmatpush.msk.msra.mxu2 %vm34_vm0, %v26_v6  ;;  %125 = vst [vmem:[#allocation1 + $0x10] ss:$2 sm:$0xff] %v120_v2  ;;  %314 = vmatmul.msk.f32.vlgmr.msra.gmra.mxu1 %vm27_vm1, %v15_v3 }
   0xc   :  { %317 = vmatmul.msk.f32.vlgmr.msra.gmra.mxu2 %vm27_vm1, %v15_v3  ;;  %311 = vmatmul.msk.f32.vlgmr.msra.gmra.mxu0 %vm27_vm1, %v15_v3 }
  0x11   :  { %v127_v8 = vld.sshfl [vmem:[#allocation1 + $0x8] sm:$0xff pattern:$0x75316420]  ;;  %v126_v9 = vld.sshfl [vmem:[#allocation1] sm:$0xff pattern:$0x75316420] }
  0x12   :  { %v128_v10 = vld.sshfl [vmem:[#allocation1 + $0x10] sm:$0xff pattern:$0x75316420]  ;;  %324 = vmatpush.msk.msrb.mxu0 %vm34_vm0, %v127_v8  ;;  %321 = vmatpush.msk.msra.mxu3 %vm34_vm0, %v126_v9 }
  0x13   :  { %327 = vmatpush.msk.msrb.mxu1 %vm34_vm0, %v128_v10  ;;  %322 = vmatmul.msk.f32.vlgmr.msra.gmra.mxu3 %vm27_vm1, %v319_v11 }
  0x14   :  { %315 = vmatmul.msk.f32.gmra.mxu1 %vm27_vm1, %v16_v7  ;;  %318 = vmatmul.msk.f32.gmra.mxu2 %vm27_vm1, %v16_v7 }
  0x15   :  { %312 = vmatmul.msk.f32.gmra.mxu0 %vm27_vm1, %v16_v7 }
  0x1b   :  { %323 = vmatmul.msk.f32.gmra.mxu3 %vm27_vm1, %v320_v12 }
  0x1c   :  { %328 = vmatmul.msk.f32.vlgmr.msrb.gmra.mxu1 %vm27_vm1, %v319_v11 }
  0x1d   :  { %325 = vmatmul.msk.f32.vlgmr.msrb.gmra.mxu0 %vm27_vm1, %v319_v11 }
  0x24   :  { %329 = vmatmul.msk.f32.gmra.mxu1 %vm27_vm1, %v320_v12 }
  0x25   :  { %326 = vmatmul.msk.f32.gmra.mxu0 %vm27_vm1, %v320_v12 }
  0x88   :  { %v81_v13 = vpop.f32.mrf.mxu1 }
  0x89   :  { %v58_v14 = vpop.f32.mrf.mxu0 }
  0x8f   :  { %v104_v15 = vpop.f32.mrf.mxu2 }
  0x91   :  { %v84_v16 = vpop.f32.mrf.mxu1 }
  0x92   :  { %v61_v17 = vpop.f32.mrf.mxu0 }
  0x96   :  { %v158_v21 = vpop.f32.mrf.mxu3 }
  0x97   :  { %v107_v18 = vpop.f32.mrf.mxu2 }
  0x98   :  { %247 = vmatpush.msrb.mxu2 %v107_v18 }
  0x99   :  { %v204_v19 = vpop.f32.mrf.mxu1 }
  0x9a   :  { %248 = vmatpush.msrb.mxu2 %v104_v15  ;;  %v181_v20 = vpop.f32.mrf.mxu0 }
  0x9c   :  { %249 = vmatpush.msrb.mxu2 %v84_v16 }
  0x9e   :  { %250 = vmatpush.msrb.mxu2 %v81_v13  ;;  %v161_v25 = vpop.f32.mrf.mxu3 }
  0xa0   :  { %251 = vmatpush.msrb.mxu2 %v61_v17 }
  0xa1   :  { %v207_v23 = vpop.f32.mrf.mxu1 }
  0xa2   :  { %252 = vmatpush.msrb.mxu2 %v58_v14  ;;  %270 = vmatpush.msrb.mxu3 %v207_v23  ;;  %v184_v24 = vpop.f32.mrf.mxu0 }
  0xa3   :  { %330 = vmatmul.msk.f32.vlgmr.msrb.gmra.mxu2 %vm230_vm2, %v216_v22 }
  0xa4   :  { %271 = vmatpush.msrb.mxu3 %v204_v19 }
  0xa6   :  { %272 = vmatpush.msrb.mxu3 %v184_v24 }
  0xa8   :  { %273 = vmatpush.msrb.mxu3 %v181_v20 }
  0xaa   :  { %274 = vmatpush.msrb.mxu3 %v161_v25 }
  0xab   :  { %331 = vmatmul.msk.f32.gmra.mxu2 %vm230_vm2, %v217_v26 }
  0xac   :  { %275 = vmatpush.msrb.mxu3 %v158_v21 }
  0xad   :  { %332 = vmatmul.msk.f32.vlgmr.msrb.gmra.mxu3 %vm230_vm2, %v216_v22 }
  0xb5   :  { %333 = vmatmul.msk.f32.gmra.mxu3 %vm230_vm2, %v217_v26 }
 0x126   :  { %v254_v27 = vpop.f32.mrf.mxu2 }
 0x127   :  { %v283_v28 = vmax.f32 %v254_v27, 0.0 }
 0x129   :  { %287 = vst [vmem:[#allocation3] sm:$0xff] %v283_v28 }
 0x12e   :  { %v257_v29 = vpop.f32.mrf.mxu2 }
 0x12f   :  { %v285_v30 = vmax.f32 %v257_v29, 0.0 }
 0x130   :  { %v277_v31 = vpop.f32.mrf.mxu3 }
 0x131   :  { %v284_v32 = vmax.f32 %v277_v31, 0.0  ;;  %288 = vst [vmem:[#allocation3 + $0x8] sm:$0xff] %v285_v30 }
 0x133   :  { %290 = vst [vmem:[#allocation3 + $0x10] sm:$0xff] %v284_v32 }
 0x138   :  { %v280_v33 = vpop.f32.mrf.mxu3 }
 0x139   :  { %v286_v34 = vmax.f32 %v280_v33, 0.0 }
 0x13b   :  { %291 = vst [vmem:[#allocation3 + $0x18] sm:$0xff] %v286_v34 }
 0x13c   :  { %304 = dma.vmem_to_hbm [thread:$0]  %s297_s29, 512, %s299_s1, [#allocation4], %s364_s5, %s364_s5, %s365_s6  }
 0x13d   :  { %361 = dma.done.wait [#allocation4], 512  }
 0x13e   :  { %362 = vsyncadd [#allocation4], 4294966784 }
 0x13f   :  { %309 = vsyncpa [#allocation4], 1 }

</bundles_post_ra>
